<compile_context>
chip_gen: v6e
topology: v6e:2x2x1
jax: 0.10.0
libtpu: 0.0.40
codegen_flags: <defaults>
</compile_context>

<pallas_src>
import functools

import jax
import jax.numpy as jnp
from jax.experimental import pallas as pl
from jax.experimental.pallas import tpu as pltpu


def _se_kernel(params_ref, x_ref, o_ref, *, c, se, hw_true):
    """One grid step: `nb` whole batch elements, block (nb, C, HWp)."""
    x = x_ref[...]                                            # native dtype

    # Global average pool over the spatial (lane) axis, f32 accumulation.
    # Padded lanes are zero, so divide by the true H*W, not HWp.
    pooled = jnp.sum(x, axis=-1, dtype=jnp.float32) * (1.0 / hw_true)  # (nb, C)

    # Packed parameter tile (f32):
    #   rows [0, c)        : w1.T  (c, se)
    #   rows [c, c+se)     : w2.T  (se, c)
    #   row  c+se          : b1    (1, se)
    #   row  c+se+1        : b2    (1, c)
    w1t = params_ref[0:c, 0:se]                               # (c, se)
    w2t = params_ref[c:c + se, 0:c]                           # (se, c)
    b1 = params_ref[c + se:c + se + 1, 0:se]                  # (1, se)
    b2 = params_ref[c + se + 1:c + se + 2, 0:c]               # (1, c)

    # Batched tiny FCs (vectorized over nb, no per-element unrolled loop):
    # FC1 -> Swish -> FC2 -> Sigmoid, all in f32.
    h = jnp.dot(pooled, w1t, preferred_element_type=jnp.float32) + b1   # (nb, se)
    h = h * jax.nn.sigmoid(h)
    s = jnp.dot(h, w2t, preferred_element_type=jnp.float32) + b2        # (nb, c)
    gate = jax.nn.sigmoid(s)                                            # (nb, c)

    # Gate the feature map in its native dtype; one full lane-dense store.
    o_ref[...] = x * gate[:, :, None].astype(x.dtype)


def _pick_nb(n, c, hwp, itemsize, budget_bytes=8 * 1024 * 1024):
    """Batch elements per grid step, chosen from a VMEM byte budget.

    The budget covers double-buffered input + double-buffered output of the x
    block (~4 copies).  Additionally cap the tile so the grid has at least
    min(n, 4) steps: that keeps DMA/compute pipelining alive and lets the
    "parallel" axis shard across v7x's two TensorCores.
    """
    bytes_per_elem = c * hwp * itemsize
    max_nb = max(1, budget_bytes // (4 * bytes_per_elem))
    min_steps = min(n, 4)
    max_nb = min(max_nb, max(1, n // min_steps), n)
    # Largest divisor of n that fits, so the grid tiles the batch exactly.
    return max(d for d in range(1, max_nb + 1) if n % d == 0)


def squeeze_excitation(x, w1, b1, w2, b2, *, donate_x=False):
    """SE block forward.

    x : (N, C, H, W) float32 / bfloat16.
    w1: (se, C)  reduce 1x1-conv weight,  b1: (se,)
    w2: (C, se)  expand 1x1-conv weight,  b2: (C,)
    """
    N, C, H, W = x.shape
    se = w1.shape[0]
    HW = H * W
    itemsize = jnp.dtype(x.dtype).itemsize

    # Lane-dense spatial axis: pad H*W up to a multiple of 128 if needed.
    HWp = pl.cdiv(HW, 128) * 128
    x3 = x.reshape(N, C, HW)
    if HWp != HW:
        x3 = jnp.pad(x3, ((0, 0), (0, 0), (0, HWp - HW)))

    # Consolidate all FC parameters into one small f32 operand (one DMA).
    pw = max(C, se)
    params = jnp.zeros((C + se + 2, pw), dtype=jnp.float32)
    params = params.at[:C, :se].set(w1.T.astype(jnp.float32))
    params = params.at[C:C + se, :C].set(w2.T.astype(jnp.float32))
    params = params.at[C + se, :se].set(b1.astype(jnp.float32))
    params = params.at[C + se + 1, :C].set(b2.astype(jnp.float32))
    params_bytes = (C + se + 2) * pw * 4

    nb = _pick_nb(N, C, HWp, itemsize)
    grid = (N // nb,)
    block_bytes = nb * C * HWp * itemsize

    # Explicit VMEM budget: 2x-buffered in + out blocks, resident params,
    # plus headroom; capped at v7x's 64 MiB physical VMEM per TensorCore.
    vmem_limit = int(min(64 * 1024 * 1024,
                         max(16 * 1024 * 1024,
                             6 * block_bytes + 2 * params_bytes + (1 << 20))))

    kernel = functools.partial(_se_kernel, c=C, se=se, hw_true=HW)

    cost = pl.CostEstimate(
        flops=2 * N * C * HW + 4 * N * C * se,
        transcendentals=N * (C + se),
        bytes_accessed=2 * N * C * HWp * itemsize + params_bytes,
    )

    out3 = pl.pallas_call(
        kernel,
        out_shape=jax.ShapeDtypeStruct((N, C, HWp), x.dtype),
        grid_spec=pltpu.PrefetchScalarGridSpec(
            num_scalar_prefetch=0,
            grid=grid,
            in_specs=[
                # Packed params: same tiny block every step (fetched once).
                pl.BlockSpec((C + se + 2, pw), lambda i: (0, 0)),
                # x tile: `nb` whole batch elements, full (C, HWp) extents.
                pl.BlockSpec((nb, C, HWp), lambda i: (i, 0, 0)),
            ],
            out_specs=pl.BlockSpec((nb, C, HWp), lambda i: (i, 0, 0)),
        ),
        compiler_params=pltpu.CompilerParams(
            dimension_semantics=("parallel",),
            vmem_limit_bytes=vmem_limit),
        cost_estimate=cost,
        # Only alias when the caller can actually donate x; otherwise XLA
        # would insert a defensive copy that costs more than it saves.
        input_output_aliases=({1: 0} if donate_x else {}),
    )(params, x3)

    if HWp != HW:
        out3 = out3[:, :, :HW]
    return out3.reshape(N, C, H, W)


if __name__ == "__main__":
    # Module config: in_channels=4, se_planes=2 ; input (2, 4, 16, 16)
    N, C, H, W = 2, 4, 16, 16
    SE = 2

    key = jax.random.PRNGKey(0)
    kx, k1, k2, k3, k4 = jax.random.split(key, 5)

    x = jax.random.normal(kx, (N, C, H, W), dtype=jnp.float32)

    # Conv2d(k=1) weights collapsed from (out, in, 1, 1) to (out, in).
    w1 = jax.random.normal(k1, (SE, C), dtype=jnp.float32) * 0.1   # reduce
    b1 = jax.random.normal(k2, (SE,), dtype=jnp.float32) * 0.1
    w2 = jax.random.normal(k3, (C, SE), dtype=jnp.float32) * 0.1   # expand
    b2 = jax.random.normal(k4, (C,), dtype=jnp.float32) * 0.1

    out = jax.jit(squeeze_excitation)(x, w1, b1, w2, b2)
    jax.block_until_ready(out)

    # Pure-JAX reference of the PyTorch forward.
    pooled = jnp.mean(x, axis=(-2, -1), keepdims=True)              # (N,C,1,1)
    h = jnp.einsum("oc,ncij->noij", w1, pooled) + b1[None, :, None, None]
    h = h * jax.nn.sigmoid(h)
    s = jnp.einsum("oc,ncij->noij", w2, h) + b2[None, :, None, None]
    ref = jax.nn.sigmoid(s) * x
    assert jnp.allclose(out, ref, atol=1e-5, rtol=1e-5), "mismatch vs reference"

    print("KERNEL_OK")
</pallas_src>

<mosaic_0001>
module attributes {stable_mosaic.version = 11 : i64} {
  func.func @_se_kernel(%arg0: i32, %arg1: memref<8x4xf32, #tpu.memory_space<vmem>>, %arg2: memref<1x4x256xf32, #tpu.memory_space<vmem>>, %arg3: memref<1x4x256xf32, #tpu.memory_space<vmem>>) attributes {dimension_semantics = [#tpu.dimension_semantics<parallel>], iteration_bounds = array<i64: 2>, scalar_prefetch = 0 : i64, scratch_operands = 0 : i64, tpu.core_type = #tpu.core_type<tc>, window_params = [{pipeline_mode = #tpu.pipeline_mode<synchronous>, transform_indices = @transform_0, window_bounds = array<i64: 8, 4>}, {transform_indices = @transform_1, window_bounds = array<i64: 1, 4, 256>}, {transform_indices = @transform_2, window_bounds = array<i64: 1, 4, 256>}]} {
    %c0 = arith.constant 0 : index
    %c0_0 = arith.constant 0 : index
    %c0_1 = arith.constant 0 : index
    %0 = vector.load %arg2[%c0, %c0_0, %c0_1] : memref<1x4x256xf32, #tpu.memory_space<vmem>>, vector<1x4x256xf32>
    %cst = arith.constant dense<0.000000e+00> : vector<1x4xf32>
    %1 = vector.multi_reduction <add>, %0, %cst [2] : vector<1x4x256xf32> to vector<1x4xf32>
    %cst_2 = arith.constant 3.906250e-03 : f32
    %2 = vector.broadcast %cst_2 : f32 to vector<1x4xf32>
    %3 = arith.mulf %1, %2 : vector<1x4xf32>
    %c0_3 = arith.constant 0 : index
    %c0_4 = arith.constant 0 : index
    %4 = vector.load %arg1[%c0_3, %c0_4] : memref<8x4xf32, #tpu.memory_space<vmem>>, vector<4x2xf32>
    %c4 = arith.constant 4 : index
    %c0_5 = arith.constant 0 : index
    %5 = vector.load %arg1[%c4, %c0_5] : memref<8x4xf32, #tpu.memory_space<vmem>>, vector<2x4xf32>
    %c6 = arith.constant 6 : index
    %c0_6 = arith.constant 0 : index
    %6 = vector.load %arg1[%c6, %c0_6] : memref<8x4xf32, #tpu.memory_space<vmem>>, vector<1x2xf32>
    %c7 = arith.constant 7 : index
    %c0_7 = arith.constant 0 : index
    %7 = vector.load %arg1[%c7, %c0_7] : memref<8x4xf32, #tpu.memory_space<vmem>>, vector<1x4xf32>
    %cst_8 = arith.constant dense<0.000000e+00> : vector<1x2xf32>
    %8 = tpu.matmul %3, %4, %cst_8 {dimension_numbers = #tpu.dot_dimension_numbers<[1], [0], [0], [1], [0, 0, 1, 1], [], []>} : vector<1x4xf32>, vector<4x2xf32>, vector<1x2xf32> -> vector<1x2xf32>
    %9 = arith.addf %8, %6 : vector<1x2xf32>
    %10 = arith.negf %9 : vector<1x2xf32>
    %11 = math.exp %10 : vector<1x2xf32>
    %cst_9 = arith.constant 1.000000e+00 : f32
    %12 = vector.broadcast %cst_9 : f32 to vector<1x2xf32>
    %13 = arith.addf %12, %11 : vector<1x2xf32>
    %14 = arith.divf %12, %13 : vector<1x2xf32>
    %15 = arith.mulf %9, %14 : vector<1x2xf32>
    %cst_10 = arith.constant dense<0.000000e+00> : vector<1x4xf32>
    %16 = tpu.matmul %15, %5, %cst_10 {dimension_numbers = #tpu.dot_dimension_numbers<[1], [0], [0], [1], [0, 0, 1, 1], [], []>} : vector<1x2xf32>, vector<2x4xf32>, vector<1x4xf32> -> vector<1x4xf32>
    %17 = arith.addf %16, %7 : vector<1x4xf32>
    %18 = arith.negf %17 : vector<1x4xf32>
    %19 = math.exp %18 : vector<1x4xf32>
    %cst_11 = arith.constant 1.000000e+00 : f32
    %20 = vector.broadcast %cst_11 : f32 to vector<1x4xf32>
    %21 = arith.addf %20, %19 : vector<1x4xf32>
    %22 = arith.divf %20, %21 : vector<1x4xf32>
    %23 = vector.shape_cast %22 : vector<1x4xf32> to vector<1x4x1xf32>
    %24 = vector.broadcast %23 : vector<1x4x1xf32> to vector<1x4x256xf32>
    %25 = arith.mulf %0, %24 : vector<1x4x256xf32>
    %c0_12 = arith.constant 0 : index
    %c0_13 = arith.constant 0 : index
    %c0_14 = arith.constant 0 : index
    %26 = vector.load %arg3[%c0_12, %c0_13, %c0_14] : memref<1x4x256xf32, #tpu.memory_space<vmem>>, vector<1x4x256xf32>
    tpu.vector_store %arg3[%c0_12, %c0_13, %c0_14], %25 {strides = array<i32>} : memref<1x4x256xf32, #tpu.memory_space<vmem>>, vector<1x4x256xf32>,
    return
  }
  func.func @transform_0(%arg0: i32) -> (i32, i32) {
    %c0_i32 = arith.constant 0 : i32
    %c0_i32_0 = arith.constant 0 : i32
    %c0_i32_1 = arith.constant 0 : i32
    return %c0_i32, %c0_i32_0 : i32, i32
  }
  func.func @transform_1(%arg0: i32) -> (i32, i32, i32) {
    %c0_i32 = arith.constant 0 : i32
    %c0_i32_0 = arith.constant 0 : i32
    %c0_i32_1 = arith.constant 0 : i32
    return %arg0, %c0_i32, %c0_i32_0 : i32, i32, i32
  }
  func.func @transform_2(%arg0: i32) -> (i32, i32, i32) {
    %c0_i32 = arith.constant 0 : i32
    %c0_i32_0 = arith.constant 0 : i32
    %c0_i32_1 = arith.constant 0 : i32
    return %arg0, %c0_i32, %c0_i32_0 : i32, i32, i32
  }
}

</mosaic_0001>

<bundles_post_ra>
// kernel: squeeze_excitation.1
= control target key start
LH: loop header
LB: loop body
LE: loop exit
PB: predicated region body
PF: predicated region fallthrough
CT: control target
= control target key end

     0   :  { %s485_s9 = smov 0   ;;  %s521_s0 = inlined_call_operand.vmem [shape: f32[8,4], index: 0, kind: input, shape index: {}]   ;;  %s522_s1 = inlined_call_operand.vmem [shape: f32[2,4,256], index: 1, kind: input, shape index: {}]   ;;  %s523_s2 = inlined_call_operand.vmem [shape: f32[2,4,256], index: 2, kind: output, shape index: {}]  }
   0x1 LB: > { %s406_s10 = sadd.s32 4294967295, %s465_s9   ;;  %p410_p0 = scmp.ge.s32.totalorder %s465_s9, 1  ;;  %s465_s9 = sphi %s485_s9, %s12_s9  }
   0x2   : > { %p112_p1 = scmp.lt.s32.totalorder %s465_s9, 3 }
   0x4   : > { %p113_p2 = pnand %p410_p0, %p112_p1 }
   0x5   : > { %p134_p3 = scmp.lt.s32.totalorder (!%p113_p2), %s406_s10, 1 }
   0x6   : > { %116 = sbr.rel (%p113_p2) target bundleno = 740 (0x2e4), region = 28 }
   0xb   : > { %s525_s10 = smov (!%p134_p3, %s406_s10), 1  ;;  %vm148_vm0 = vcmask 1043456   ;;  %v467_v5 = vmov 0.0   ;;  %v155_v6 = vld [vmem:[%s521_s0] sm:$0xf]  ;;  %vm468_vm1 = vmmov 0   ;;  %v160_v7 = vlaneseq }
   0xc   : > { %s423_s11 = sshll.u32 %s525_s10, 3  ;;  %429 = vmatprep.subr.mxu0 %v467_v5  ;;  %434 = vmatprep.subr.mxu1 %v467_v5  ;;  %vm166_vm2 = vcmask 31744   ;;  %v156_v14 = vld [vmem:[%s521_s0 + $0x4] sm:$0x3]  ;;  %vm253_vm3 = vcmask 1041408   ;;  %vm249_vm4 = vcmask 15360  }
   0xd   : > { %s138_s14 = scalar_lea.vmem %s522_s1, %s423_s11  ;;  %430 = vmatpush3.msk.msra.mxu0 %vm148_vm0, %v155_v6  ;;  %431 = vmatprep.mubr.msk.f32.mxu0 %vm468_vm1, %v467_v5  ;;  %v161_v8 = vand.u32 127, %v160_v7  ;;  %v163_v9 = vshrl.u32 %v160_v7, 7  ;;  %v157_v15 = vld [vmem:[%s521_s0 + $0x6] sm:$0x1]  ;;  %v158_v24 = vld [vmem:[%s521_s0 + $0x7] sm:$0x1]  ;;  %s143_s25 = scalar_lea.vmem %s523_s2, %s423_s11 }
   0xe   : > { %v144_v0 = vld [vmem:[%s138_s14] sm:$0xff]  ;;  %436 = vmatprep.mubr.msk.f32.mxu1 %vm468_vm1, %v467_v5  ;;  %435 = vmatpush3.msk.msra.mxu1 %vm253_vm3, %v156_v14  ;;  %v469_v34 = vmov 839922192  }
   0xf   : > { %v146_v1 = vcombine.high %v144_v0, %v144_v0  ;;  %v149_v2 = vsel %vm148_vm0, %v144_v0, 0.0  ;;  %v164_v10 = vsub.s32 %v161_v8, %v163_v9  ;;  %v335_v31 = vsub.s32 0, %v163_v9 }
  0x10   : > { %v342_v35 = vunpack.c.l.s4 %v469_v34 }
  0x11   : > { %v150_v3 = vsel %vm148_vm0, %v146_v1, 0.0 }
  0x12   : > { %v151_v4 = vadd.f32 %v150_v3, %v149_v2  ;;  %v343_v36 = vunpack.c.0.s8 %v342_v35 }
  0x14   : > { %152 = vadd.xlane.f32.xlu0 %v151_v4  ;;  %v346_v37 = vsub.s32 %v343_v36, %v163_v9 }
  0x9d   : > { %v153_v11 = vpop.xlane.xlu0 %152 }
  0x9e   : > { %v154_v12 = vmul.f32 0.00390625, %v153_v11 }
  0xa0   : > { %v165_v13 = vrot.slane %v154_v12, %v164_v10 }
  0xa2   : > { %432 = vmatmul.mubr.msk.f32.vlgmr.msra.gmra.mxu0 %vm166_vm2, %v165_v13 }
 0x162   : > { %v238_v16 = vpop.f32.mrf.mxu0 }
 0x163   : > { %v239_v17 = vadd.f32 %v238_v16, %v157_v15 }
 0x164   : > { %v433_v18 = vpop.f32.mrf.mxu0 }
 0x165   : > { %v417_v19 = vmul.f32 -1.442695, %v239_v17 }
 0x167   : > { %451 = vpow2.f32 %v417_v19 }
 0x174   : > { %v452_v20 = vpop.eup %451 }
 0x175   : > { %v245_v21 = vadd.f32 1.0, %v452_v20 }
 0x177   : > { %453 = vrcp.f32 %v245_v21 }
 0x184   : > { %v454_v22 = vpop.eup %453 }
 0x185   : > { %v248_v23 = vmul.f32 %v454_v22, %v239_v17 }
 0x187   : > { %437 = vmatmul.mubr.msk.f32.vlgmr.msra.gmra.mxu1 %vm249_vm4, %v248_v23 }
 0x247   : > { %v323_v25 = vpop.f32.mrf.mxu1 }
 0x248   : > { %v324_v26 = vadd.f32 %v323_v25, %v158_v24 }
 0x249   : > { %v438_v27 = vpop.f32.mrf.mxu1 }
 0x24a   : > { %v420_v28 = vmul.f32 -1.442695, %v324_v26 }
 0x24c   : > { %455 = vpow2.f32 %v420_v28 }
 0x259   : > { %v456_v29 = vpop.eup %455 }
 0x25a   : > { %v330_v30 = vadd.f32 1.0, %v456_v29 }
 0x25c   : > { %457 = vrcp.f32 %v330_v30 }
 0x269   : > { %v458_v32 = vpop.eup %457 }
 0x26a   : > { %v336_v33 = vrot.slane %v458_v32, %v335_v31 }
 0x26c   : > { %338 = vbcast.lane.b32.xlu0 %v336_v33, 256 }
 0x2de   : > { %v339_v38 = vpop.permute.xlu0 %338 }
 0x2df   : > { %v347_v39 = vrot.slane %v339_v38, %v346_v37 }
 0x2e1   : > { %v349_v40 = vmul.f32 %v347_v39, %v144_v0 }
 0x2e3   : > { %350 = vst [vmem:[%s143_s25] sm:$0xff] %v349_v40 }
 0x2e4 PF: > { %s12_s9 = sadd.s32 1, %s465_s9  }
 0x2e5   : > { %p9_p4 = scmp.ge.s32.totalorder %s12_s9, 4  }
 0x2e7   :  { %11 = sbr.rel (!%p9_p4) target bundleno = 1 (0x1), region = 58 }

</bundles_post_ra>
